<compile_context>
chip_gen: v6e
topology: v6e:2x2x1
jax: 0.10.0
libtpu: 0.0.40
codegen_flags: <defaults>
</compile_context>

<pallas_src>
import functools

import jax
import jax.numpy as jnp
from jax.experimental import pallas as pl
from jax.experimental.pallas import tpu as pltpu

_MIB = 1024 * 1024


def _edge_kernel(hp_ref, u_ref, b_ref, o_ref, *, row_chunk, compute_dtype):
    """One batch tile of  e[b, p] = sigmoid( <h_para[b, p, :], u[b, :]> + bias ).

    hp_ref: (bt, P, H)  paragraph states, native dtype (VMEM, streamed)
    u_ref : (bt, H)     f32 pre-contracted hidden states  u = h_hidden · W
    b_ref : (1,)        bilinear bias (SMEM scalar, f32)
    o_ref : (bt, P)     sigmoid edge scores
    """
    bt = hp_ref.shape[0]
    bias = b_ref[0].astype(jnp.float32)

    def _chunk(r0, rc):
        hp_c = hp_ref[pl.ds(r0, rc)]                              # (rc, P, H) native dtype
        u_c = u_ref[pl.ds(r0, rc)].astype(compute_dtype)          # (rc, H)
        # products in compute_dtype (bf16 on v6e/v7x packed VALU, f32 otherwise),
        # accumulation of the lane reduce in f32.
        prod = hp_c.astype(compute_dtype) * u_c[:, None, :]       # (rc, P, H)
        e = jnp.sum(prod.astype(jnp.float32), axis=-1) + bias     # (rc, P) f32
        o_ref[pl.ds(r0, rc)] = jax.nn.sigmoid(e).astype(o_ref.dtype)

    if row_chunk >= bt:
        # Small tile: single straight-line chunk (no dynamic slicing at all).
        _chunk(0, bt)
    else:
        num_chunks = bt // row_chunk  # row_chunk always divides bt (see _row_chunk)

        def body(c, carry):
            r0 = pl.multiple_of(c * row_chunk, row_chunk)
            _chunk(r0, row_chunk)
            return carry

        jax.lax.fori_loop(0, num_chunks, body, 0)


def _vmem_caps():
    """(vmem_limit cap, tile budget) keyed on the actual TPU generation."""
    try:
        cap = int(getattr(pltpu.get_tpu_info(), "vmem_capacity_bytes", 64 * _MIB))
    except Exception:
        cap = 64 * _MIB  # conservative fallback: smallest modern part (v7x, 64 MiB/TC)
    # Headroom for Mosaic internals: 128 MiB parts (v5e/v6e) -> 96 MiB, 64 MiB (v7x) -> 48 MiB.
    limit_cap = min(cap * 3 // 4, 96 * _MIB)
    tile_budget = int(limit_cap * 0.85)
    return limit_cap, tile_budget


def _row_chunk(bt, P, H, pack, chunk_budget=2 * _MIB):
    """Rows per in-kernel reduction chunk: bounds the f32 multiply intermediate to roughly
    `chunk_budget` while staying a sublane-pack multiple that exactly divides bt."""
    if bt <= pack:
        return bt
    rc = pack
    while rc * 2 <= bt and bt % (rc * 2) == 0 and 2 * rc * P * H * 4 <= chunk_budget:
        rc *= 2
    return rc


def _footprint_bytes(bt, P, H, in_itemsize, out_itemsize, rc):
    """Per-step VMEM footprint: double-buffered pipeline blocks + bounded compute scratch."""
    return (2 * bt * P * H * in_itemsize      # h_para block, 2 buffers
            + 2 * bt * H * 4                  # u block (always f32), 2 buffers
            + 2 * bt * P * out_itemsize       # output block, 2 buffers
            + rc * P * H * 4 + rc * P * 4)    # per-chunk f32 product + partial sums


def _choose_batch_tile(B, P, H, in_itemsize, out_itemsize, tile_budget, min_steps=4):
    """Largest sublane-packed batch tile whose double-buffered footprint fits the
    per-generation VMEM budget, preferring >= min_steps grid steps (pipelining + both
    v7x TensorCores). cdiv grid handles any B; no single-giant-block fallback."""
    pack = max(8, 32 // in_itemsize)   # packed sublane tile: 8 f32 / 16 bf16 / 32 int8
    if B <= pack:
        return B                       # block == full batch dim: always layout-legal
    cands = [c for c in (2048, 1024, 512, 256, 128, 64, 32, 16, 8)
             if c % pack == 0 and c <= B]
    fits = [c for c in cands
            if _footprint_bytes(c, P, H, in_itemsize, out_itemsize,
                                _row_chunk(c, P, H, pack)) <= tile_budget]
    for c in fits:                     # large-first among tiles that keep >= min_steps steps
        if -(-B // c) >= min_steps:
            return c
    if fits:                           # small B: biggest tile that fits the budget
        return fits[0]
    return pack                        # degenerate (huge P*H): minimum granularity


def para_edge_learner(h_para, h_hidden, W, bias):
    """h_para: (B, P, H), h_hidden: (B, H), W: (H, H), bias: (1,)  ->  (B, P) sigmoid scores."""
    B, P, H = h_para.shape
    in_itemsize = jnp.dtype(h_para.dtype).itemsize
    out_dtype = h_para.dtype
    out_itemsize = jnp.dtype(out_dtype).itemsize

    # u[b, i] = sum_j W[i, j] * h_hidden[b, j]; contract W's second axis directly (no W.T copy),
    # f32 accumulation. Hoisted out of the kernel (tiny: O(B*H) output) per the perf review so
    # the Pallas kernel is a pure HBM-bound streaming reduce over h_para.
    u = jax.lax.dot_general(
        h_hidden, W,
        dimension_numbers=(((1,), (1,)), ((), ())),
        preferred_element_type=jnp.float32,
    )  # (B, H) f32

    bias32 = bias.astype(jnp.float32)  # SMEM scalar

    limit_cap, tile_budget = _vmem_caps()
    bt = _choose_batch_tile(B, P, H, in_itemsize, out_itemsize, tile_budget, min_steps=4)
    pack = max(8, 32 // in_itemsize)
    rc = _row_chunk(bt, P, H, pack)
    num_steps = -(-B // bt)  # cdiv grid; ragged last block's OOB rows are dropped on store

    # Products in the input dtype on packed-VALU parts (bf16 on v6e/v7x), f32 accumulation.
    # (On v5e the compiler upcasts the bf16 multiply; results are unchanged either way.)
    compute_dtype = jnp.float32 if in_itemsize >= 4 else h_para.dtype

    foot = _footprint_bytes(bt, P, H, in_itemsize, out_itemsize, rc)
    vmem_limit = int(min(limit_cap, max(16 * _MIB, foot + foot // 4 + 2 * _MIB)))

    kernel = functools.partial(_edge_kernel, row_chunk=rc, compute_dtype=compute_dtype)

    return pl.pallas_call(
        kernel,
        out_shape=jax.ShapeDtypeStruct((B, P), out_dtype),
        grid=(num_steps,),
        in_specs=[
            pl.BlockSpec((bt, P, H), lambda b: (b, 0, 0)),         # h_para tile (streamed)
            pl.BlockSpec((bt, H), lambda b: (b, 0)),               # u tile (f32)
            pl.BlockSpec(memory_space=pltpu.MemorySpace.SMEM),     # bias scalar
        ],
        out_specs=pl.BlockSpec((bt, P), lambda b: (b, 0)),         # (bt, P) output block
        compiler_params=pltpu.CompilerParams(
            dimension_semantics=("parallel",),
            vmem_limit_bytes=vmem_limit,
        ),
    )(h_para, u, bias32)


def _reference(h_para, h_hidden, W, bias):
    # Pure-JAX reference of torch's nn.Bilinear(H, H, 1) + sigmoid for validation.
    u = jnp.einsum("ij,bj->bi", W, h_hidden)                  # (B, H)
    e = jnp.einsum("bpi,bi->bp", h_para, u) + bias[0]         # (B, P)
    return jax.nn.sigmoid(e)


if __name__ == "__main__":
    B, P, H = 2, 8, 32  # batch, num_paragraphs, hidden_dim

    key = jax.random.PRNGKey(0)
    k1, k2, k3, k4 = jax.random.split(key, 4)

    h_para = jax.random.normal(k1, (B, P, H), dtype=jnp.float32)
    h_hidden = jax.random.normal(k2, (B, H), dtype=jnp.float32)

    # Deterministic init matching torch's nn.Bilinear default: U(-1/sqrt(H), 1/sqrt(H)).
    bound = 1.0 / jnp.sqrt(jnp.float32(H))
    W = jax.random.uniform(k3, (H, H), dtype=jnp.float32, minval=-bound, maxval=bound)
    bias = jax.random.uniform(k4, (1,), dtype=jnp.float32, minval=-bound, maxval=bound)

    out = para_edge_learner(h_para, h_hidden, W, bias)
    out = jax.block_until_ready(out)

    ref = _reference(h_para, h_hidden, W, bias)
    assert out.shape == (B, P)
    assert jnp.allclose(out, ref, atol=1e-5, rtol=1e-5)

    print("KERNEL_OK")
</pallas_src>

<mosaic_0001>
module attributes {stable_mosaic.version = 11 : i64} {
  func.func @_edge_kernel(%arg0: i32, %arg1: memref<2x8x32xf32, #tpu.memory_space<vmem>>, %arg2: memref<2x32xf32, #tpu.memory_space<vmem>>, %arg3: memref<1xf32, #tpu.memory_space<smem>>, %arg4: memref<2x8xf32, #tpu.memory_space<vmem>>) attributes {dimension_semantics = [#tpu.dimension_semantics<parallel>], iteration_bounds = array<i64: 1>, scalar_prefetch = 0 : i64, scratch_operands = 0 : i64, tpu.core_type = #tpu.core_type<tc>, window_params = [{transform_indices = @transform_0, window_bounds = array<i64: 2, 8, 32>}, {transform_indices = @transform_1, window_bounds = array<i64: 2, 32>}, {transform_indices = @transform_2, window_bounds = array<i64: 1>}, {transform_indices = @transform_3, window_bounds = array<i64: 2, 8>}]} {
    %c0 = arith.constant 0 : index
    %0 = memref.load %arg3[%c0] : memref<1xf32, #tpu.memory_space<smem>>
    %c0_0 = arith.constant 0 : index
    %c0_1 = arith.constant 0 : index
    %c0_2 = arith.constant 0 : index
    %1 = vector.load %arg1[%c0_0, %c0_1, %c0_2] : memref<2x8x32xf32, #tpu.memory_space<vmem>>, vector<2x8x32xf32>
    %c0_3 = arith.constant 0 : index
    %c0_4 = arith.constant 0 : index
    %2 = vector.load %arg2[%c0_3, %c0_4] : memref<2x32xf32, #tpu.memory_space<vmem>>, vector<2x32xf32>
    %3 = vector.shape_cast %2 : vector<2x32xf32> to vector<2x1x32xf32>
    %4 = vector.broadcast %3 : vector<2x1x32xf32> to vector<2x8x32xf32>
    %5 = arith.mulf %1, %4 : vector<2x8x32xf32>
    %cst = arith.constant dense<0.000000e+00> : vector<2x8xf32>
    %6 = vector.multi_reduction <add>, %5, %cst [2] : vector<2x8x32xf32> to vector<2x8xf32>
    %7 = vector.broadcast %0 : f32 to vector<2x8xf32>
    %8 = arith.addf %6, %7 : vector<2x8xf32>
    %9 = arith.negf %8 : vector<2x8xf32>
    %10 = math.exp %9 : vector<2x8xf32>
    %cst_5 = arith.constant 1.000000e+00 : f32
    %11 = vector.broadcast %cst_5 : f32 to vector<2x8xf32>
    %12 = arith.addf %11, %10 : vector<2x8xf32>
    %13 = arith.divf %11, %12 : vector<2x8xf32>
    %c0_6 = arith.constant 0 : index
    %c0_7 = arith.constant 0 : index
    %14 = vector.load %arg4[%c0_6, %c0_7] : memref<2x8xf32, #tpu.memory_space<vmem>>, vector<2x8xf32>
    tpu.vector_store %arg4[%c0_6, %c0_7], %13 {strides = array<i32>} : memref<2x8xf32, #tpu.memory_space<vmem>>, vector<2x8xf32>,
    return
  }
  func.func @transform_0(%arg0: i32) -> (i32, i32, i32) {
    %c0_i32 = arith.constant 0 : i32
    %c0_i32_0 = arith.constant 0 : i32
    %c0_i32_1 = arith.constant 0 : i32
    return %arg0, %c0_i32, %c0_i32_0 : i32, i32, i32
  }
  func.func @transform_1(%arg0: i32) -> (i32, i32) {
    %c0_i32 = arith.constant 0 : i32
    %c0_i32_0 = arith.constant 0 : i32
    return %arg0, %c0_i32 : i32, i32
  }
  func.func @transform_2(%arg0: i32) -> i32 {
    %c0_i32 = arith.constant 0 : i32
    %c0_i32_0 = arith.constant 0 : i32
    return %c0_i32 : i32
  }
  func.func @transform_3(%arg0: i32) -> (i32, i32) {
    %c0_i32 = arith.constant 0 : i32
    %c0_i32_0 = arith.constant 0 : i32
    return %arg0, %c0_i32 : i32, i32
  }
}

</mosaic_0001>

<bundles_post_ra>
// kernel: tpu_custom_call.1
= control target key start
LH: loop header
LB: loop body
LE: loop exit
PB: predicated region body
PF: predicated region fallthrough
CT: control target
= control target key end

     0   :  { %9 = vsyncpa [#allocation4], 0  ;;  %s220_s0 = inlined_call_operand.hbm [shape: f32[2,8,32], index: 0, kind: input, shape index: {}]   ;;  %s221_s1 = inlined_call_operand.vmem [shape: f32[2,32], index: 1, kind: input, shape index: {}]   ;;  %s222_s2 = inlined_call_operand.<no memory space> [shape: f32[1], index: 2, kind: input, shape index: {}]   ;;  %s223_s3 = inlined_call_operand.hbm [shape: f32[2,8], index: 3, kind: output, shape index: {}]  }
   0x1   :  { %10 = vsyncpa [#allocation5], 0  ;;  %s183_s12 = smov [#allocation3]  }
   0x2   :  { %s16_s13 = sshll.u32 %s183_s12, 4  ;;  %s17_s13 = int_to_ptr.vmem [resolvable:$true] %s16_s13 }
   0x3   :  { %s147_s14 = scalar_lea.vmem %s17_s13, 256  ;;  %p152_p1 = scmp.lt.s32.totalorder %s17_s13, %s17_s13 }
   0x4   :  { %p148_p0 = scmp.ne.s32.totalorder %s17_s13, %s147_s14  ;;  %p153_p2 = scmp.lt.s32.totalorder %s147_s14, %s147_s14 }
   0x6   :  { %p154_p3 = por %p153_p2, %p152_p1 }
   0x8   :  { %p155_p4 = pnand %p154_p3, %p148_p0 }
   0xa   :  { %158 = shalt.err (!%p155_p4)
}
   0xb   :  { %s184_s15 = smov 128   ;;  %s185_s16 = smov 8  }
   0xc   :  { %22 = dma.hbm_to_vmem [thread:$0]  %s220_s0, 256, %s17_s13, [#allocation4], %s184_s15, %s184_s15, %s185_s16  }
   0xd   :  { %179 = dma.done.wait [#allocation4], 256  }
   0xe   :  { %180 = vsyncadd [#allocation4], 4294967040  ;;  %v46_v0 = vlaneseq  ;;  %v186_v1 = vmov 1966171168   ;;  %v31_v10 = vld [vmem:[#allocation3] sm:$0xff]  ;;  %vm69_vm0 = vcmask 261120   ;;  %v76_v21 = vstv %s222_s2 }
   0xf   :  { %v44_v2 = vunpack.c.l.s4 %v186_v1  ;;  %v123_v7 = vld.sshfl [vmem:[%s221_s1] sm:$0x11 pattern:$0x75316420]  ;;  %v32_v13 = vld [vmem:[#allocation3 + $0x8] sm:$0xff]  ;;  %s187_s1 = smov [#allocation6]  }
  0x10   :  { %v47_v3 = vshrl.u32 %v46_v0, 7  ;;  %v42_v8 = vcombine.high %v123_v7, %v123_v7  ;;  %v94_v19 = vand.u32 127, %v46_v0  ;;  %s114_s22 = sshll.u32 %s187_s1, 4  ;;  %vm103_vm1 = vcmask 1041409   ;;  %s115_s22 = int_to_ptr.vmem [resolvable:$true] %s114_s22 }
  0x11   :  { %v45_v4 = vunpack.c.0.s8 %v44_v2  ;;  %vm106_vm2 = vcmask 58368   ;;  %s159_s2 = scalar_lea.vmem %s115_s22, 32  ;;  %p164_p6 = scmp.lt.s32.totalorder %s115_s22, %s115_s22 }
  0x12   :  { %v59_v6 = vsub.s32 0, %v47_v3  ;;  %v97_v20 = vsub.s32 %v94_v19, %v47_v3  ;;  %p160_p5 = scmp.ne.s32.totalorder %s115_s22, %s159_s2  ;;  %p165_p7 = scmp.lt.s32.totalorder %s159_s2, %s159_s2 }
  0x13   :  { %v48_v5 = vsub.s32 %v45_v4, %v47_v3 }
  0x14   :  { %p166_p8 = por %p165_p7, %p164_p6 }
  0x15   :  { %v49_v9 = vrot.slane %v123_v7, %v48_v5  ;;  %v56_v12 = vrot.slane %v42_v8, %v48_v5 }
  0x16   :  { %p167_p9 = pnand %p166_p8, %p160_p5 }
  0x17   :  { %v60_v11 = vrot.slane %v49_v9, %v59_v6  ;;  %v64_v15 = vrot.slane %v56_v12, %v59_v6 }
  0x19   :  { %v67_v14 = vmul.f32 %v60_v11, %v31_v10  ;;  %v68_v17 = vmul.f32 %v64_v15, %v32_v13 }
  0x1b   :  { %v70_v16 = vsel %vm69_vm0, %v67_v14, 0.0  ;;  %v73_v18 = vsel %vm69_vm0, %v68_v17, 0.0 }
  0x1c   :  { %71 = vadd.xlane.f32.xlu0 %v70_v16 }
  0x20   :  { %74 = vadd.xlane.f32.xlu0 %v73_v18 }
  0xa5   :  { %v72_v22 = vpop.xlane.xlu0 %71 }
  0xa6   :  { %v77_v23 = vadd.f32 %v76_v21, %v72_v22 }
  0xa8   :  { %v124_v24 = vmul.f32 -1.442695, %v77_v23 }
  0xa9   :  { %v75_v25 = vpop.xlane.xlu0 %74 }
  0xaa   :  { %131 = vpow2.f32 %v124_v24  ;;  %v78_v26 = vadd.f32 %v76_v21, %v75_v25 }
  0xac   :  { %v125_v27 = vmul.f32 -1.442695, %v78_v26 }
  0xae   :  { %133 = vpow2.f32 %v125_v27 }
  0xb7   :  { %v132_v28 = vpop.eup %131 }
  0xb8   :  { %v85_v29 = vadd.f32 1.0, %v132_v28 }
  0xba   :  { %135 = vrcp.f32 %v85_v29 }
  0xbb   :  { %v134_v30 = vpop.eup %133 }
  0xbc   :  { %v86_v31 = vadd.f32 1.0, %v134_v30 }
  0xbe   :  { %137 = vrcp.f32 %v86_v31 }
  0xc7   :  { %v136_v32 = vpop.eup %135 }
  0xc8   :  { %v98_v34 = vrot.slane %v136_v32, %v97_v20 }
  0xcb   :  { %v138_v33 = vpop.eup %137 }
  0xcc   :  { %v102_v35 = vrot.slane %v138_v33, %v97_v20 }
  0xce   :  { %v104_v36 = vsel %vm103_vm1, %v102_v35, %v98_v34 }
  0xcf   :  { %107 = vst.msk [vmem:[#allocation6] sm:$0x3] %vm106_vm2, %v104_v36 }
  0xd0   :  { %170 = shalt.err (!%p167_p9)
}
  0xd1   :  { %117 = dma.vmem_to_hbm [thread:$0]  %s115_s22, 32, %s223_s3, [#allocation5]  }
  0xd2   :  { %181 = dma.done.wait [#allocation5], 32  }
  0xd3   :  { %182 = vsyncadd [#allocation5], 4294967264 }
  0xd4   :  { %121 = vsyncpa [#allocation4], 1 }
  0xd5   :  { %122 = vsyncpa [#allocation5], 1 }

</bundles_post_ra>
